<compile_context>
chip_gen: v7x
topology: tpu7x:2x2x1
jax: 0.10.0
libtpu: 0.0.40
codegen_flags: <defaults>
</compile_context>

<pallas_src>
import jax
import jax.numpy as jnp
from jax.experimental import pallas as pl
from jax.experimental.pallas import tpu as pltpu


def _deconv_bn_relu_kernel(w_ref, scale_ref, bias_ref, col_ref, o_ref):
    # w_ref     : (Cout, Cin*K)   deconv weights, resident across grid steps
    # scale_ref : (Cout, 1)       folded BN scale  = gamma / sqrt(var + eps)
    # bias_ref  : (Cout, 1)       folded BN bias   = beta - mean * scale
    # col_ref   : (Cin*K, B)      im2col'd neighbour features for B octants
    # o_ref     : (Cout, B)       lane-dense output tile
    y = jnp.dot(w_ref[...], col_ref[...], preferred_element_type=jnp.float32)
    y = y * scale_ref[...] + bias_ref[...]
    o_ref[...] = jnp.maximum(y, 0.0).astype(o_ref.dtype)


def octree_deconv_bn_relu(data_in, neigh, weight, bn_gamma, bn_beta, bn_mean,
                          bn_var, *, eps=1e-5, block_octants=256):
    """Fused OctreeDeconv(kernel_size=[3], stride=1) + BatchNorm2d(eval) + ReLU.

    data_in : (1, Cin, H, 1) float32, NCHW octree feature layout
    neigh   : (H, K) int32 neighbour table at this depth, -1 marks empty neighbour
    weight  : (Cout, Cin, K) float32 deconv taps (gather-form parameterisation)
    bn_*    : (Cout,) BatchNorm2d affine params / running statistics
    """
    _, Cin, H, _ = data_in.shape
    Cout, Cin_w, K = weight.shape
    assert Cin_w == Cin and neigh.shape == (H, K)

    x_ch = data_in[0, :, :, 0]                                  # (Cin, H) channels-first

    # --- im2col via one XLA gather (wrapper side, per perf feedback) ------------
    neigh_t = neigh.T                                           # (K, H) tiny int table
    mask = neigh_t >= 0
    gathered = jnp.where(mask[None, :, :],
                         x_ch[:, jnp.clip(neigh_t, 0)], 0.0)    # (Cin, K, H)
    col = gathered.reshape(Cin * K, H)                          # row index = c*K + k

    w_mat = weight.reshape(Cout, Cin * K)

    # --- fold BatchNorm (inference form) into per-channel scale / bias ----------
    scale = (bn_gamma / jnp.sqrt(bn_var + eps)).astype(jnp.float32).reshape(Cout, 1)
    bias = (bn_beta.astype(jnp.float32).reshape(Cout, 1)
            - bn_mean.astype(jnp.float32).reshape(Cout, 1) * scale)

    # pad the octant axis to a multiple of the block size (lane-dense stores)
    B = block_octants
    H_pad = ((H + B - 1) // B) * B
    if H_pad != H:
        col = jnp.pad(col, ((0, 0), (0, H_pad - H)))

    out = pl.pallas_call(
        _deconv_bn_relu_kernel,
        out_shape=jax.ShapeDtypeStruct((Cout, H_pad), data_in.dtype),
        grid_spec=pltpu.PrefetchScalarGridSpec(
            num_scalar_prefetch=0,
            grid=(H_pad // B,),
            in_specs=[
                pl.BlockSpec((Cout, Cin * K), lambda j: (0, 0)),  # weights (resident)
                pl.BlockSpec((Cout, 1), lambda j: (0, 0)),        # BN scale
                pl.BlockSpec((Cout, 1), lambda j: (0, 0)),        # BN bias
                pl.BlockSpec((Cin * K, B), lambda j: (0, j)),     # im2col block (B octants)
            ],
            out_specs=pl.BlockSpec((Cout, B), lambda j: (0, j)),  # lane-dense output tile
        ),
        compiler_params=pltpu.CompilerParams(
            dimension_semantics=("parallel",)),
    )(w_mat, scale, bias, col)                                   # (Cout, H_pad)

    out = out[:, :H]                                             # drop octant padding
    return out.reshape(1, Cout, H, 1)                            # NCHW, no transpose needed


if __name__ == "__main__":
    key = jax.random.PRNGKey(0)
    Cin, Cout = 32, 64        # channels in / out
    H = 1024                  # octants at this octree depth
    K = 27                    # kernel_size=[3] -> 3x3x3 taps
    eps = 1e-5

    k1, k2, k3, k4, k5, k6 = jax.random.split(key, 6)
    data_in = jax.random.normal(k1, (1, Cin, H, 1), dtype=jnp.float32)
    weight = jax.random.normal(k2, (Cout, Cin, K), dtype=jnp.float32) / jnp.sqrt(Cin * K)
    gamma = jax.random.uniform(k3, (Cout,), jnp.float32, 0.5, 1.5)
    beta = jax.random.normal(k4, (Cout,), jnp.float32) * 0.1
    mean = jax.random.normal(k5, (Cout,), jnp.float32) * 0.1
    var = jax.random.uniform(k6, (Cout,), jnp.float32, 0.5, 1.5)

    # deterministic synthetic neighbour table: tap k looks at octant j + (k - K//2);
    # out-of-range entries and every 7th entry are empty (-1) to exercise masking.
    j_idx = jnp.arange(H)[:, None]
    k_idx = jnp.arange(K)[None, :]
    neigh = j_idx + (k_idx - K // 2)
    empty = (neigh < 0) | (neigh >= H) | (((j_idx * K + k_idx) % 7) == 0)
    neigh = jnp.where(empty, -1, neigh).astype(jnp.int32)

    out = octree_deconv_bn_relu(data_in, neigh, weight, gamma, beta, mean, var,
                                eps=eps, block_octants=256)
    out = jax.block_until_ready(out)

    # pure-JAX reference of the forward (deconv gather form + eval BN + ReLU)
    x_ch = data_in[0, :, :, 0]                                   # (Cin, H)
    acc = jnp.zeros((Cout, H), jnp.float32)
    for k in range(K):
        idx = neigh[:, k]
        xk = jnp.where((idx >= 0)[None, :], x_ch[:, jnp.clip(idx, 0)], 0.0)
        acc = acc + weight[:, :, k] @ xk
    scale_ref = gamma / jnp.sqrt(var + eps)
    bias_ref = beta - mean * scale_ref
    ref = jnp.maximum(acc * scale_ref[:, None] + bias_ref[:, None], 0.0)
    ref = ref.reshape(1, Cout, H, 1)

    assert out.shape == (1, Cout, H, 1), out.shape
    assert out.dtype == data_in.dtype
    assert jnp.allclose(out, ref, rtol=1e-2, atol=1e-2), \
        float(jnp.max(jnp.abs(out - ref)))
    print("KERNEL_OK")
</pallas_src>

<mosaic_0001>
module attributes {stable_mosaic.version = 11 : i64} {
  func.func @_deconv_bn_relu_kernel(%arg0: i32, %arg1: memref<64x864xf32, #tpu.memory_space<vmem>>, %arg2: memref<64x1xf32, #tpu.memory_space<vmem>>, %arg3: memref<64x1xf32, #tpu.memory_space<vmem>>, %arg4: memref<864x256xf32, #tpu.memory_space<vmem>>, %arg5: memref<64x256xf32, #tpu.memory_space<vmem>>) attributes {dimension_semantics = [#tpu.dimension_semantics<parallel>], iteration_bounds = array<i64: 4>, scalar_prefetch = 0 : i64, scratch_operands = 0 : i64, tpu.core_type = #tpu.core_type<tc>, window_params = [{pipeline_mode = #tpu.pipeline_mode<synchronous>, transform_indices = @transform_0, window_bounds = array<i64: 64, 864>}, {pipeline_mode = #tpu.pipeline_mode<synchronous>, transform_indices = @transform_1, window_bounds = array<i64: 64, 1>}, {pipeline_mode = #tpu.pipeline_mode<synchronous>, transform_indices = @transform_2, window_bounds = array<i64: 64, 1>}, {transform_indices = @transform_3, window_bounds = array<i64: 864, 256>}, {transform_indices = @transform_4, window_bounds = array<i64: 64, 256>}]} {
    %c0 = arith.constant 0 : index
    %c0_0 = arith.constant 0 : index
    %0 = vector.load %arg1[%c0, %c0_0] : memref<64x864xf32, #tpu.memory_space<vmem>>, vector<64x864xf32>
    %c0_1 = arith.constant 0 : index
    %c0_2 = arith.constant 0 : index
    %1 = vector.load %arg4[%c0_1, %c0_2] : memref<864x256xf32, #tpu.memory_space<vmem>>, vector<864x256xf32>
    %cst = arith.constant dense<0.000000e+00> : vector<64x256xf32>
    %2 = tpu.matmul %0, %1, %cst {dimension_numbers = #tpu.dot_dimension_numbers<[1], [0], [0], [1], [0, 0, 1, 1], [], []>} : vector<64x864xf32>, vector<864x256xf32>, vector<64x256xf32> -> vector<64x256xf32>
    %c0_3 = arith.constant 0 : index
    %c0_4 = arith.constant 0 : index
    %3 = vector.load %arg2[%c0_3, %c0_4] : memref<64x1xf32, #tpu.memory_space<vmem>>, vector<64x1xf32>
    %4 = vector.broadcast %3 : vector<64x1xf32> to vector<64x256xf32>
    %5 = arith.mulf %2, %4 : vector<64x256xf32>
    %c0_5 = arith.constant 0 : index
    %c0_6 = arith.constant 0 : index
    %6 = vector.load %arg3[%c0_5, %c0_6] : memref<64x1xf32, #tpu.memory_space<vmem>>, vector<64x1xf32>
    %7 = vector.broadcast %6 : vector<64x1xf32> to vector<64x256xf32>
    %8 = arith.addf %5, %7 : vector<64x256xf32>
    %cst_7 = arith.constant 0.000000e+00 : f32
    %9 = vector.broadcast %cst_7 : f32 to vector<64x256xf32>
    %10 = arith.maximumf %8, %9 : vector<64x256xf32>
    %c0_8 = arith.constant 0 : index
    %c0_9 = arith.constant 0 : index
    %11 = vector.load %arg5[%c0_8, %c0_9] : memref<64x256xf32, #tpu.memory_space<vmem>>, vector<64x256xf32>
    tpu.vector_store %arg5[%c0_8, %c0_9], %10 {strides = array<i32>} : memref<64x256xf32, #tpu.memory_space<vmem>>, vector<64x256xf32>,
    return
  }
  func.func @transform_0(%arg0: i32) -> (i32, i32) {
    %c0_i32 = arith.constant 0 : i32
    %c0_i32_0 = arith.constant 0 : i32
    %c0_i32_1 = arith.constant 0 : i32
    return %c0_i32, %c0_i32_0 : i32, i32
  }
  func.func @transform_1(%arg0: i32) -> (i32, i32) {
    %c0_i32 = arith.constant 0 : i32
    %c0_i32_0 = arith.constant 0 : i32
    %c0_i32_1 = arith.constant 0 : i32
    return %c0_i32, %c0_i32_0 : i32, i32
  }
  func.func @transform_2(%arg0: i32) -> (i32, i32) {
    %c0_i32 = arith.constant 0 : i32
    %c0_i32_0 = arith.constant 0 : i32
    %c0_i32_1 = arith.constant 0 : i32
    return %c0_i32, %c0_i32_0 : i32, i32
  }
  func.func @transform_3(%arg0: i32) -> (i32, i32) {
    %c0_i32 = arith.constant 0 : i32
    %c0_i32_0 = arith.constant 0 : i32
    return %c0_i32, %arg0 : i32, i32
  }
  func.func @transform_4(%arg0: i32) -> (i32, i32) {
    %c0_i32 = arith.constant 0 : i32
    %c0_i32_0 = arith.constant 0 : i32
    return %c0_i32, %arg0 : i32, i32
  }
}

</mosaic_0001>

<bundles_post_ra>
// kernel: tpu_custom_call.1
= control target key start
LH: loop header
LB: loop body
LE: loop exit
PB: predicated region body
PF: predicated region fallthrough
CT: control target
= control target key end

     0   :  { %9 = vsyncpa [#allocation3], 0  ;;  %s2308_s0 = inlined_call_operand.hbm [shape: f32[64,864], index: 0, kind: input, shape index: {}]   ;;  %s2309_s1 = inlined_call_operand.vmem [shape: f32[64,1], index: 1, kind: input, shape index: {}]   ;;  %s2310_s2 = inlined_call_operand.vmem [shape: f32[64,1], index: 2, kind: input, shape index: {}]   ;;  %s2311_s3 = inlined_call_operand.hbm [shape: f32[864,1024], index: 3, kind: input, shape index: {}]   ;;  %s2312_s4 = inlined_call_operand.hbm [shape: f32[64,1024], index: 4, kind: output, shape index: {}]  }
   0x1   :  { %10 = vsyncpa [#allocation6], 0 }
   0x2   :  { %12 = vsyncpa [#allocation6 + $0x1], 0 }
   0x3   :  { %13 = vsyncpa [#allocation4], 0 }
   0x4   :  { %15 = vsyncpa [#allocation4 + $0x1], 0  ;;  %s1768_s15 = smov 0   ;;  %s1770_s16 = smov 0  }
   0x5   :  { %s1772_s17 = smov 0   ;;  %s1774_s18 = smov 0  }
   0x6 LB: > { %s1789_s19 = sadd.s32 4294967295, %s1728_s18   ;;  %s1241_s20 = sadd.s32 4294967294, %s1728_s18   ;;  %s1728_s18 = sphi %s1774_s18, %s2335_s18   ;;  %s1724_s17 = sphi %s1772_s17, %s2334_s17   ;;  %s1720_s16 = sphi %s1770_s16, %s2333_s16   ;;  %s1716_s15 = sphi %s1768_s15, %s2332_s15  }
   0x7   : > { %s1793_s21 = sadd.s32 1, %s1728_s18   ;;  %s91_s22 = sadd.s32 1, %s1724_s17 }
   0x8   : > { %s88_s23 = ssub.s32 %s1728_s18, %s1793_s21  ;;  %p98_p0 = scmp.ne.s32.totalorder %s1724_s17, %s1720_s16 }
   0x9   : > { %p89_p1 = scmp.eq.s32.totalorder %s88_s23, 0  ;;  %p99_p2 = scmp.eq.s32.totalorder %s1728_s18, 0 }
   0xa   : > { %p104_p3 = scmp.ne.s32.totalorder %s1720_s16, %s1716_s15  ;;  %p2313_p4 = scmp.eq.s32.totalorder %s1789_s19, 0 }
   0xb   : > { %s1805_s24 = scalar_select %p89_p1, %s1724_s17, %s91_s22  }
   0xc   : > { %p1807_p5 = por %p99_p2, %p98_p0  ;;  %p1813_p6 = por %p2313_p4, %p104_p3 }
   0xd   : > { %p128_p7 = scmp.eq.s32.totalorder %s1789_s19, 3  ;;  %p134_p8 = scmp.eq.s32.totalorder %s1241_s20, 3 }
   0xe   : > { %s2317_s25 = scalar_select %p1807_p5, 1, 0 }
   0xf   : > { %s2318_s26 = scalar_select %p1813_p6, 1, 0 }
  0x10   : > { %p1242_p9 = scmp.ge.s32.totalorder %s1728_s18, 1  ;;  %p141_p10 = scmp.lt.s32.totalorder %s1728_s18, 5 }
  0x11   : > { %p1820_p11 = por %p128_p7, %p98_p0  ;;  %p1824_p12 = por %p134_p8, %p104_p3 }
  0x12   : > { %p1828_p13 = pnand %p1242_p9, %p141_p10  ;;  %s1730_s30 = smov [#allocation2]  }
  0x13   : > { %s2319_s27 = scalar_select %p1820_p11, 1, 0 }
  0x14   : > { %s2320_s28 = scalar_select %p1824_p12, 1, 0 }
  0x15   : > { %s2321_s29 = scalar_select %p1828_p13, 1, 0 }
  0x16   : > { %p1539_p1 = pneg %p1828_p13  ;;  %s153_s5 = sshll.u32 %s1730_s30, 4  ;;  %s154_s5 = int_to_ptr.vmem [resolvable:$true] %s153_s5 }
  0x17   : > { %s173_s7 = sand.u32 1, %s1724_s17   ;;  %s1600_s10 = scalar_lea.hbm %s2308_s0, 7168 }
  0x18   : > { %p1836_p2 = pnand %p1539_p1, %p2313_p4  ;;  %p1601_p3 = scmp.ne.s32.totalorder %s2308_s0, %s1600_s10 }
  0x19   : > { %p1607_p10 = scmp.lt.u32.totalorder %s1600_s10, %s2308_s0 }
  0x1a   : > { %p1602_p7 = pneg %p1836_p2 }
  0x1c   : > { %p1603_p8 = pnand %p1602_p7, %p1601_p3 }
  0x1e   : > { %p1604_p9 = pneg %p1603_p8 }
  0x20   : > { %p1609_p1 = pnand %p1607_p10, %p1604_p9 }
  0x22   : > { %1612 = shalt.err (!%p1609_p1)
}
  0x23   : > { %s1613_s20 = scalar_lea.vmem %s154_s5, 7168  ;;  %p1621_p11 = scmp.lt.s32.totalorder %s154_s5, %s154_s5 }
  0x24   : > { %p1614_p4 = scmp.ne.s32.totalorder %s154_s5, %s1613_s20  ;;  %p1622_p6 = scmp.lt.s32.totalorder %s1613_s20, %s1613_s20 }
  0x26   : > { %p1616_p0 = pnand %p1614_p4, %p1602_p7  ;;  %p1623_p13 = por %p1622_p6, %p1621_p11 }
  0x28   : > { %p1617_p12 = pneg %p1616_p0 }
  0x2a   : > { %p1624_p5 = pnand %p1623_p13, %p1617_p12 }
  0x2c   : > { %1627 = shalt.err (!%p1624_p5)
}
  0x2d   : > { %s1731_s22 = smov 896   ;;  %s1732_s23 = smov 56  }
  0x2e   : > { %1542 = dma.hbm_to_vmem [thread:$0]  (!%p1836_p2), %s2308_s0, 7168, %s154_s5, [#allocation3], %s1731_s22, %s1731_s22, %s1732_s23  }
  0x2f   : > { %p2323_p3 = scmp.ne.s32.totalorder %s2317_s25, 0  ;;  %p2324_p8 = scmp.lt.s32.totalorder %s1728_s18, 4 }
  0x30   : > { %s1529_s10 = smul.u32 1728, %s173_s7  ;;  %s1263_s11 = sshll.u32 %s1728_s18, 8 }
  0x31   : > { %p1862_p4 = pnand %p2324_p8, %p2323_p3  ;;  %s1870_s14 = scalar_lea.hbm %s2311_s3, %s1263_s11 }
  0x32   : > { %s177_s5 = scalar_lea.vmem [#allocation5], %s1529_s10  ;;  %s1874_s6 = scalar_lea.sflag [#allocation6], %s173_s7 }
  0x33   : > { %s184_s25 = sshll.u32 %s177_s5, 4  ;;  %s1628_s20 = scalar_lea.hbm %s1870_s14, 27648  ;;  %s1872_s25 = int_to_ptr.vmem [resolvable:$true] %s184_s25 }
  0x34   : > { %p1629_p5 = scmp.ne.s32.totalorder %s1870_s14, %s1628_s20  ;;  %p1630_p6 = pneg %p1862_p4 }
  0x35   : > { %s1633_s30 = scalar_lea.hbm %s2311_s3, 110592  ;;  %p1634_p13 = scmp.lt.u32.totalorder %s1870_s14, %s2311_s3 }
  0x36   : > { %p1631_p11 = pnand %p1630_p6, %p1629_p5  ;;  %p1635_p2 = scmp.lt.u32.totalorder %s1633_s30, %s1628_s20 }
  0x37   : > { %p1637_p7 = scmp.lt.u32.totalorder %s1628_s20, %s1870_s14 }
  0x38   : > { %p1632_p12 = pneg %p1631_p11  ;;  %p1636_p0 = por %p1635_p2, %p1634_p13 }
  0x3a   : > { %p1638_p9 = por %p1637_p7, %p1636_p0 }
  0x3c   : > { %p1639_p10 = pnand %p1638_p9, %p1632_p12 }
  0x3e   : > { %1642 = shalt.err (!%p1639_p10)
}
  0x3f   : > { %s1643_s7 = scalar_lea.vmem %s1872_s25, 27648  ;;  %s1733_s10 = smov [#allocation5]  }
  0x40   : > { %p1644_p1 = scmp.ne.s32.totalorder %s1872_s25, %s1643_s7  ;;  %s1648_s12 = sshll.u32 %s1733_s10, 4  ;;  %s1649_s12 = int_to_ptr.vmem [resolvable:$false] %s1648_s12 }
  0x41   : > { %s1650_s13 = scalar_lea.vmem %s1649_s12, 55296  ;;  %p1651_p5 = scmp.lt.s32.totalorder %s1872_s25, %s1649_s12 }
  0x42   : > { %p1646_p3 = pnand %p1644_p1, %p1630_p6  ;;  %p1652_p11 = scmp.lt.s32.totalorder %s1650_s13, %s1643_s7 }
  0x44   : > { %p1647_p8 = pneg %p1646_p3  ;;  %p1653_p13 = por %p1652_p11, %p1651_p5 }
  0x46   : > { %p1654_p2 = pnand %p1653_p13, %p1647_p8 }
  0x48   : > { %1657 = shalt.err (!%p1654_p2)
}
  0x49   : > { %s1734_s5 = smov 1024   ;;  %s1735_s20 = smov 256  }
  0x4a   : > { %s1736_s22 = smov 16   ;;  %p2326_p6 = scmp.ne.s32.totalorder %s2321_s29, 0 }
  0x4b   : > { %1546 = dma.hbm_to_vmem [thread:$0]  (!%p1862_p4), %s1870_s14, 27648, %s1872_s25, %s1874_s6, %s1734_s5, %s1735_s20, %s1736_s22  }
  0x4c   : > { %196 = sbr.rel (%p2326_p6) target bundleno = 486 (0x1e6), region = 36  ;;  %p2327_p12 = scmp.eq.s32.totalorder (!%p2326_p6), %s1789_s19, 0 }
  0x53   : > { %1703 = dma.done.wait (%p2327_p12), [#allocation3], 7168   ;;  %p2328_p0 = pmov %p2327_p12 }
  0x54   : > { %s1909_s23 = sand.u32 1, %s1720_s16   ;;  %p2329_p4 = scmp.ne.s32.totalorder %s2318_s26, 0 }
  0x55   : > { %1705 = vsyncadd (%p2328_p0), [#allocation3], 4294960128  ;;  %s1530_s30 = smul.u32 1728, %s1909_s23  ;;  %s203_s8 = scalar_lea.sflag [#allocation6], %s1909_s23 }
  0x57   : > { %s1913_s11 = scalar_lea.vmem [#allocation5], %s1530_s30 }
  0x58   : > { %1707 = dma.done.wait (%p2329_p4), %s203_s8, 27648  }
  0x59   : > { %1709 = vsyncadd (%p2329_p4), %s203_s8, 4294939648  ;;  %v290_v0 = vld [vmem:[%s1913_s11 + $0x8] sm:$0xff]  ;;  %v292_v1 = vld [vmem:[%s1913_s11 + $0x18] sm:$0xff]  ;;  %vm505_vm0 = vcmask 785408   ;;  %s1264_s14 = sshll.u32 %s1789_s19, 8  ;;  %s1143_s19 = scalar_lea.sflag [#allocation4], %s1909_s23 }
  0x5a   : > { %v418_v2 = vld [vmem:[%s1913_s11 + $0x408] sm:$0xff]  ;;  %v1265_v3 = vpack.c.bf16 %v292_v1, %v290_v0  ;;  %v420_v4 = vld [vmem:[%s1913_s11 + $0x418] sm:$0xff]  ;;  %v289_v5 = vld [vmem:[%s1913_s11] sm:$0xff]  ;;  %s2261_s10 = scalar_lea.hbm %s2312_s4, %s1264_s14  ;;  %p2330_p9 = scmp.ne.s32.totalorder %s2319_s27, 0 }
  0x5b   : > { %v291_v6 = vld [vmem:[%s1913_s11 + $0x10] sm:$0xff]  ;;  %v1393_v7 = vpack.c.bf16 %v420_v4, %v418_v2  ;;  %v417_v9 = vld [vmem:[%s1913_s11 + $0x400] sm:$0xff]  ;;  %v294_v11 = vld [vmem:[%s1913_s11 + $0x28] sm:$0xff]  ;;  %s1739_s13 = smov [#allocation7]  }
  0x5c   : > { %v1267_v8 = vpack.c.bf16 %v291_v6, %v289_v5  ;;  %v419_v10 = vld [vmem:[%s1913_s11 + $0x410] sm:$0xff]  ;;  %1266 = vmatprep.subr.bf16.mxu1 %v1265_v3  ;;  %v296_v13 = vld [vmem:[%s1913_s11 + $0x38] sm:$0xff]  ;;  %v422_v14 = vld [vmem:[%s1913_s11 + $0x428] sm:$0xff]  ;;  %s1662_s5 = sshll.u32 %s1739_s13, 4  ;;  %s1663_s5 = int_to_ptr.vmem [resolvable:$false] %s1662_s5 }
  0x5d   : > { %v1395_v12 = vpack.c.bf16 %v419_v10, %v417_v9  ;;  %v424_v15 = vld [vmem:[%s1913_s11 + $0x438] sm:$0xff]  ;;  %1394 = vmatprep.subr.bf16.mxu0 %v1393_v7  ;;  %v1269_v16 = vpack.c.bf16 %v296_v13, %v294_v11  ;;  %v293_v18 = vld [vmem:[%s1913_s11 + $0x20] sm:$0xff]  ;;  %v295_v19 = vld [vmem:[%s1913_s11 + $0x30] sm:$0xff]  ;;  %s1664_s20 = scalar_lea.vmem %s1663_s5, 4096 }
  0x5e   : > { %1268 = vmatpush1.bf16.msra.mxu1 %v1267_v8  ;;  %v1397_v17 = vpack.c.bf16 %v424_v15, %v422_v14  ;;  %v421_v20 = vld [vmem:[%s1913_s11 + $0x420] sm:$0xff]  ;;  %v1271_v21 = vpack.c.bf16 %v295_v19, %v293_v18  ;;  %v423_v22 = vld [vmem:[%s1913_s11 + $0x430] sm:$0xff]  ;;  %v298_v23 = vld [vmem:[%s1913_s11 + $0x48] sm:$0xff] }
  0x5f   : > { %1396 = vmatpush1.bf16.msra.mxu0 %v1395_v12  ;;  %v300_v24 = vld [vmem:[%s1913_s11 + $0x58] sm:$0xff]  ;;  %1270 = vmatprep.subr.bf16.mxu1 %v1269_v16  ;;  %v1399_v25 = vpack.c.bf16 %v423_v22, %v421_v20  ;;  %v426_v27 = vld [vmem:[%s1913_s11 + $0x448] sm:$0xff]  ;;  %v297_v29 = vld [vmem:[%s1913_s11 + $0x40] sm:$0xff] }
  0x60   : > { %1398 = vmatprep.subr.bf16.mxu0 %v1397_v17  ;;  %v1273_v26 = vpack.c.bf16 %v300_v24, %v298_v23  ;;  %v428_v28 = vld [vmem:[%s1913_s11 + $0x458] sm:$0xff]  ;;  %v299_v31 = vld [vmem:[%s1913_s11 + $0x50] sm:$0xff]  ;;  %v425_v32 = vld [vmem:[%s1913_s11 + $0x440] sm:$0xff] }
  0x61   : > { %v1401_v30 = vpack.c.bf16 %v428_v28, %v426_v27  ;;  %v427_v33 = vld [vmem:[%s1913_s11 + $0x450] sm:$0xff]  ;;  %v1275_v34 = vpack.c.bf16 %v299_v31, %v297_v29  ;;  %v302_v35 = vld [vmem:[%s1913_s11 + $0x68] sm:$0xff]  ;;  %v304_v36 = vld [vmem:[%s1913_s11 + $0x78] sm:$0xff] }
  0x62   : > { %1272 = vmatpush1.bf16.msra.mxu1 %v1271_v21  ;;  %v430_v37 = vld [vmem:[%s1913_s11 + $0x468] sm:$0xff]  ;;  %v1403_v38 = vpack.c.bf16 %v427_v33, %v425_v32  ;;  %v1277_v39 = vpack.c.bf16 %v304_v36, %v302_v35  ;;  %v432_v40 = vld [vmem:[%s1913_s11 + $0x478] sm:$0xff]  ;;  %v301_v41 = vld [vmem:[%s1913_s11 + $0x60] sm:$0xff] }
  0x63   : > { %1400 = vmatpush1.bf16.msra.mxu0 %v1399_v25  ;;  %1274 = vmatprep.subr.bf16.mxu1 %v1273_v26  ;;  %v303_v42 = vld [vmem:[%s1913_s11 + $0x70] sm:$0xff]  ;;  %v1405_v43 = vpack.c.bf16 %v432_v40, %v430_v37  ;;  %v429_v44 = vld [vmem:[%s1913_s11 + $0x460] sm:$0xff]  ;;  %v306_v46 = vld [vmem:[%s1913_s11 + $0x88] sm:$0xff] }
  0x64   : > { %1402 = vmatprep.subr.bf16.mxu0 %v1401_v30  ;;  %v431_v45 = vld [vmem:[%s1913_s11 + $0x470] sm:$0xff]  ;;  %v308_v47 = vld [vmem:[%s1913_s11 + $0x98] sm:$0xff]  ;;  %v434_v48 = vld [vmem:[%s1913_s11 + $0x488] sm:$0xff]  ;;  %v1279_v50 = vpack.c.bf16 %v303_v42, %v301_v41 }
  0x65   : > { %v436_v49 = vld [vmem:[%s1913_s11 + $0x498] sm:$0xff]  ;;  %v1407_v51 = vpack.c.bf16 %v431_v45, %v429_v44  ;;  %v1281_v52 = vpack.c.bf16 %v308_v47, %v306_v46  ;;  %v305_v53 = vld [vmem:[%s1913_s11 + $0x80] sm:$0xff]  ;;  %v307_v54 = vld [vmem:[%s1913_s11 + $0x90] sm:$0xff]  ;;  %v1737_v47 = vmov 0  }
  0x66   : > { %1276 = vmatpush1.bf16.msra.mxu1 %v1275_v34  ;;  %v433_v55 = vld [vmem:[%s1913_s11 + $0x480] sm:$0xff]  ;;  %v1409_v56 = vpack.c.bf16 %v436_v49, %v434_v48  ;;  %v435_v57 = vld [vmem:[%s1913_s11 + $0x490] sm:$0xff]  ;;  %v310_v58 = vld [vmem:[%s1913_s11 + $0xa8] sm:$0xff]  ;;  %v1283_v62 = vpack.c.bf16 %v307_v54, %v305_v53  ;;  %1599 = vset.pattern.permute.xlu1 %v1737_v47 }
  0x67   : > { %1404 = vmatpush1.bf16.msra.mxu0 %v1403_v38  ;;  %1278 = vmatprep.subr.bf16.mxu1 %v1277_v39  ;;  %v312_v59 = vld [vmem:[%s1913_s11 + $0xb8] sm:$0xff]  ;;  %v438_v60 = vld [vmem:[%s1913_s11 + $0x4a8] sm:$0xff]  ;;  %v1411_v63 = vpack.c.bf16 %v435_v57, %v433_v55  ;;  %v309_v1 = vld [vmem:[%s1913_s11 + $0xa0] sm:$0xff] }
  0x68   : > { %1406 = vmatprep.subr.bf16.mxu0 %v1405_v43  ;;  %v440_v61 = vld [vmem:[%s1913_s11 + $0x4b8] sm:$0xff]  ;;  %v1285_v0 = vpack.c.bf16 %v312_v59, %v310_v58  ;;  %v311_v2 = vld [vmem:[%s1913_s11 + $0xb0] sm:$0xff]  ;;  %v437_v3 = vld [vmem:[%s1913_s11 + $0x4a0] sm:$0xff]  ;;  %1598 = vset.pattern.permute.xlu0 %v1737_v47 }
  0x69   : > { %v1413_v4 = vpack.c.bf16 %v440_v61, %v438_v60  ;;  %v439_v5 = vld [vmem:[%s1913_s11 + $0x4b0] sm:$0xff]  ;;  %v314_v6 = vld [vmem:[%s1913_s11 + $0xc8] sm:$0xff]  ;;  %v316_v7 = vld [vmem:[%s1913_s11 + $0xd8] sm:$0xff]  ;;  %v1287_v10 = vpack.c.bf16 %v311_v2, %v309_v1 }
  0x6a   : > { %1280 = vmatpush1.bf16.msra.mxu1 %v1279_v50  ;;  %v442_v8 = vld [vmem:[%s1913_s11 + $0x4c8] sm:$0xff]  ;;  %v444_v9 = vld [vmem:[%s1913_s11 + $0x4d8] sm:$0xff]  ;;  %v1415_v11 = vpack.c.bf16 %v439_v5, %v437_v3  ;;  %v1289_v12 = vpack.c.bf16 %v316_v7, %v314_v6  ;;  %v313_v13 = vld [vmem:[%s1913_s11 + $0xc0] sm:$0xff] }
  0x6b   : > { %1408 = vmatpush1.bf16.msra.mxu0 %v1407_v51  ;;  %1282 = vmatprep.subr.bf16.mxu1 %v1281_v52  ;;  %v315_v14 = vld [vmem:[%s1913_s11 + $0xd0] sm:$0xff]  ;;  %v441_v15 = vld [vmem:[%s1913_s11 + $0x4c0] sm:$0xff]  ;;  %v1417_v16 = vpack.c.bf16 %v444_v9, %v442_v8  ;;  %v318_v18 = vld [vmem:[%s1913_s11 + $0xe8] sm:$0xff] }
  0x6c   : > { %1410 = vmatprep.subr.bf16.mxu0 %v1409_v56  ;;  %v443_v17 = vld [vmem:[%s1913_s11 + $0x4d0] sm:$0xff]  ;;  %v320_v19 = vld [vmem:[%s1913_s11 + $0xf8] sm:$0xff]  ;;  %v446_v20 = vld [vmem:[%s1913_s11 + $0x4e8] sm:$0xff]  ;;  %v1291_v22 = vpack.c.bf16 %v315_v14, %v313_v13 }
  0x6d   : > { %v448_v21 = vld [vmem:[%s1913_s11 + $0x4f8] sm:$0xff]  ;;  %v1419_v23 = vpack.c.bf16 %v443_v17, %v441_v15  ;;  %v1293_v24 = vpack.c.bf16 %v320_v19, %v318_v18  ;;  %v317_v25 = vld [vmem:[%s1913_s11 + $0xe0] sm:$0xff]  ;;  %v319_v26 = vld [vmem:[%s1913_s11 + $0xf0] sm:$0xff] }
  0x6e   : > { %1284 = vmatpush1.bf16.msra.mxu1 %v1283_v62  ;;  %v445_v27 = vld [vmem:[%s1913_s11 + $0x4e0] sm:$0xff]  ;;  %v1421_v28 = vpack.c.bf16 %v448_v21, %v446_v20  ;;  %v447_v29 = vld [vmem:[%s1913_s11 + $0x4f0] sm:$0xff]  ;;  %v322_v30 = vld [vmem:[%s1913_s11 + $0x108] sm:$0xff]  ;;  %v1295_v34 = vpack.c.bf16 %v319_v26, %v317_v25 }
  0x6f   : > { %1412 = vmatpush1.bf16.msra.mxu0 %v1411_v63  ;;  %1286 = vmatprep.subr.bf16.mxu1 %v1285_v0  ;;  %v324_v31 = vld [vmem:[%s1913_s11 + $0x118] sm:$0xff]  ;;  %v450_v32 = vld [vmem:[%s1913_s11 + $0x508] sm:$0xff]  ;;  %v1423_v35 = vpack.c.bf16 %v447_v29, %v445_v27  ;;  %v321_v37 = vld [vmem:[%s1913_s11 + $0x100] sm:$0xff] }
  0x70   : > { %1414 = vmatprep.subr.bf16.mxu0 %v1413_v4  ;;  %v452_v33 = vld [vmem:[%s1913_s11 + $0x518] sm:$0xff]  ;;  %v1297_v36 = vpack.c.bf16 %v324_v31, %v322_v30  ;;  %v323_v38 = vld [vmem:[%s1913_s11 + $0x110] sm:$0xff]  ;;  %v449_v39 = vld [vmem:[%s1913_s11 + $0x500] sm:$0xff] }
  0x71   : > { %v1425_v40 = vpack.c.bf16 %v452_v33, %v450_v32  ;;  %v451_v41 = vld [vmem:[%s1913_s11 + $0x510] sm:$0xff]  ;;  %v326_v42 = vld [vmem:[%s1913_s11 + $0x128] sm:$0xff]  ;;  %v328_v43 = vld [vmem:[%s1913_s11 + $0x138] sm:$0xff]  ;;  %v1299_v46 = vpack.c.bf16 %v323_v38, %v321_v37 }
  0x72   : > { %1288 = vmatpush1.bf16.msra.mxu1 %v1287_v10  ;;  %v454_v44 = vld [vmem:[%s1913_s11 + $0x528] sm:$0xff]  ;;  %v456_v45 = vld [vmem:[%s1913_s11 + $0x538] sm:$0xff]  ;;  %v1427_v48 = vpack.c.bf16 %v451_v41, %v449_v39  ;;  %v1301_v49 = vpack.c.bf16 %v328_v43, %v326_v42  ;;  %v325_v50 = vld [vmem:[%s1913_s11 + $0x120] sm:$0xff] }
  0x73   : > { %1416 = vmatpush1.bf16.msra.mxu0 %v1415_v11  ;;  %1290 = vmatprep.subr.bf16.mxu1 %v1289_v12  ;;  %v327_v51 = vld [vmem:[%s1913_s11 + $0x130] sm:$0xff]  ;;  %v453_v52 = vld [vmem:[%s1913_s11 + $0x520] sm:$0xff]  ;;  %v1429_v53 = vpack.c.bf16 %v456_v45, %v454_v44  ;;  %v330_v55 = vld [vmem:[%s1913_s11 + $0x148] sm:$0xff] }
  0x74   : > { %1418 = vmatprep.subr.bf16.mxu0 %v1417_v16  ;;  %v455_v54 = vld [vmem:[%s1913_s11 + $0x530] sm:$0xff]  ;;  %v332_v56 = vld [vmem:[%s1913_s11 + $0x158] sm:$0xff]  ;;  %v458_v57 = vld [vmem:[%s1913_s11 + $0x548] sm:$0xff]  ;;  %v1303_v59 = vpack.c.bf16 %v327_v51, %v325_v50 }
  0x75   : > { %v460_v58 = vld [vmem:[%s1913_s11 + $0x558] sm:$0xff]  ;;  %v1431_v60 = vpack.c.bf16 %v455_v54, %v453_v52  ;;  %v1305_v61 = vpack.c.bf16 %v332_v56, %v330_v55  ;;  %v329_v62 = vld [vmem:[%s1913_s11 + $0x140] sm:$0xff]  ;;  %v331_v63 = vld [vmem:[%s1913_s11 + $0x150] sm:$0xff] }
  0x76   : > { %1292 = vmatpush1.bf16.msra.mxu1 %v1291_v22  ;;  %v457_v0 = vld [vmem:[%s1913_s11 + $0x540] sm:$0xff]  ;;  %v1433_v1 = vpack.c.bf16 %v460_v58, %v458_v57  ;;  %v459_v2 = vld [vmem:[%s1913_s11 + $0x550] sm:$0xff]  ;;  %v334_v3 = vld [vmem:[%s1913_s11 + $0x168] sm:$0xff]  ;;  %v1307_v7 = vpack.c.bf16 %v331_v63, %v329_v62 }
  0x77   : > { %1420 = vmatpush1.bf16.msra.mxu0 %v1419_v23  ;;  %1294 = vmatprep.subr.bf16.mxu1 %v1293_v24  ;;  %v336_v4 = vld [vmem:[%s1913_s11 + $0x178] sm:$0xff]  ;;  %v462_v5 = vld [vmem:[%s1913_s11 + $0x568] sm:$0xff]  ;;  %v333_v8 = vld [vmem:[%s1913_s11 + $0x160] sm:$0xff]  ;;  %v1435_v9 = vpack.c.bf16 %v459_v2, %v457_v0 }
  0x78   : > { %1422 = vmatprep.subr.bf16.mxu0 %v1421_v28  ;;  %v464_v6 = vld [vmem:[%s1913_s11 + $0x578] sm:$0xff]  ;;  %v1309_v10 = vpack.c.bf16 %v336_v4, %v334_v3  ;;  %v335_v11 = vld [vmem:[%s1913_s11 + $0x170] sm:$0xff]  ;;  %v461_v12 = vld [vmem:[%s1913_s11 + $0x560] sm:$0xff] }
  0x79   : > { %v463_v13 = vld [vmem:[%s1913_s11 + $0x570] sm:$0xff]  ;;  %v1437_v14 = vpack.c.bf16 %v464_v6, %v462_v5  ;;  %v338_v15 = vld [vmem:[%s1913_s11 + $0x188] sm:$0xff]  ;;  %v340_v16 = vld [vmem:[%s1913_s11 + $0x198] sm:$0xff]  ;;  %v1311_v21 = vpack.c.bf16 %v335_v11, %v333_v8 }
  0x7a   : > { %1296 = vmatpush1.bf16.msra.mxu1 %v1295_v34  ;;  %v238_v17 = vld [vmem:[#allocation2 + $0x28] sm:$0xff]  ;;  %v468_v19 = vld [vmem:[%s1913_s11 + $0x598] sm:$0xff]  ;;  %v1439_v22 = vpack.c.bf16 %v463_v13, %v461_v12  ;;  %v1313_v23 = vpack.c.bf16 %v340_v16, %v338_v15  ;;  %v337_v24 = vld [vmem:[%s1913_s11 + $0x180] sm:$0xff] }
  0x7b   : > { %1424 = vmatpush1.bf16.msra.mxu0 %v1423_v35  ;;  %1298 = vmatprep.subr.bf16.mxu1 %v1297_v36  ;;  %v466_v18 = vld [vmem:[%s1913_s11 + $0x588] sm:$0xff]  ;;  %v339_v25 = vld [vmem:[%s1913_s11 + $0x190] sm:$0xff]  ;;  %v465_v26 = vld [vmem:[%s1913_s11 + $0x580] sm:$0xff] }
  0x7c   : > { %1426 = vmatprep.subr.bf16.mxu0 %v1425_v40  ;;  %820 = vmatprep.mubr.f32.mxu0 %v238_v17  ;;  %v234_v20 = vld [vmem:[#allocation2 + $0x8] sm:$0xff]  ;;  %v1441_v27 = vpack.c.bf16 %v468_v19, %v466_v18  ;;  %v467_v28 = vld [vmem:[%s1913_s11 + $0x590] sm:$0xff]  ;;  %v344_v30 = vld [vmem:[%s1913_s11 + $0x1b8] sm:$0xff]  ;;  %v1315_v33 = vpack.c.bf16 %v339_v25, %v337_v24 }
  0x7d   : > { %594 = vmatprep.mubr.f32.mxu1 %v234_v20  ;;  %v342_v29 = vld [vmem:[%s1913_s11 + $0x1a8] sm:$0xff]  ;;  %v472_v32 = vld [vmem:[%s1913_s11 + $0x5b8] sm:$0xff]  ;;  %v1443_v34 = vpack.c.bf16 %v467_v28, %v465_v26  ;;  %v341_v36 = vld [vmem:[%s1913_s11 + $0x1a0] sm:$0xff] }
  0x7e   : > { %1300 = vmatpush1.bf16.msra.mxu1 %v1299_v46  ;;  %v470_v31 = vld [vmem:[%s1913_s11 + $0x5a8] sm:$0xff]  ;;  %v1317_v35 = vpack.c.bf16 %v344_v30, %v342_v29  ;;  %v343_v37 = vld [vmem:[%s1913_s11 + $0x1b0] sm:$0xff]  ;;  %v469_v38 = vld [vmem:[%s1913_s11 + $0x5a0] sm:$0xff] }
  0x7f   : > { %1428 = vmatpush1.bf16.msra.mxu0 %v1427_v48  ;;  %1302 = vmatprep.subr.bf16.mxu1 %v1301_v49  ;;  %v1445_v39 = vpack.c.bf16 %v472_v32, %v470_v31  ;;  %v471_v40 = vld [vmem:[%s1913_s11 + $0x5b0] sm:$0xff]  ;;  %v346_v41 = vld [vmem:[%s1913_s11 + $0x1c8] sm:$0xff]  ;;  %v348_v42 = vld [vmem:[%s1913_s11 + $0x1d8] sm:$0xff]  ;;  %v1319_v45 = vpack.c.bf16 %v343_v37, %v341_v36 }
  0x80   : > { %1430 = vmatprep.subr.bf16.mxu0 %v1429_v53  ;;  %v474_v43 = vld [vmem:[%s1913_s11 + $0x5c8] sm:$0xff]  ;;  %v476_v44 = vld [vmem:[%s1913_s11 + $0x5d8] sm:$0xff]  ;;  %v1447_v46 = vpack.c.bf16 %v471_v40, %v469_v38  ;;  %v1321_v47 = vpack.c.bf16 %v348_v42, %v346_v41  ;;  %v345_v48 = vld [vmem:[%s1913_s11 + $0x1c0] sm:$0xff] }
  0x81   : > { %v347_v49 = vld [vmem:[%s1913_s11 + $0x1d0] sm:$0xff]  ;;  %v473_v50 = vld [vmem:[%s1913_s11 + $0x5c0] sm:$0xff]  ;;  %v1449_v51 = vpack.c.bf16 %v476_v44, %v474_v43  ;;  %v350_v53 = vld [vmem:[%s1913_s11 + $0x1e8] sm:$0xff] }
  0x82   : > { %1304 = vmatpush1.bf16.msra.mxu1 %v1303_v59  ;;  %v475_v52 = vld [vmem:[%s1913_s11 + $0x5d0] sm:$0xff]  ;;  %v352_v54 = vld [vmem:[%s1913_s11 + $0x1f8] sm:$0xff]  ;;  %v478_v55 = vld [vmem:[%s1913_s11 + $0x5e8] sm:$0xff]  ;;  %v1323_v57 = vpack.c.bf16 %v347_v49, %v345_v48 }
  0x83   : > { %1432 = vmatpush1.bf16.msra.mxu0 %v1431_v60  ;;  %1306 = vmatprep.subr.bf16.mxu1 %v1305_v61  ;;  %v480_v56 = vld [vmem:[%s1913_s11 + $0x5f8] sm:$0xff]  ;;  %v1451_v58 = vpack.c.bf16 %v475_v52, %v473_v50  ;;  %v1325_v59 = vpack.c.bf16 %v352_v54, %v350_v53  ;;  %v349_v60 = vld [vmem:[%s1913_s11 + $0x1e0] sm:$0xff]  ;;  %v351_v61 = vld [vmem:[%s1913_s11 + $0x1f0] sm:$0xff] }
  0x84   : > { %1434 = vmatprep.subr.bf16.mxu0 %v1433_v1  ;;  %v477_v62 = vld [vmem:[%s1913_s11 + $0x5e0] sm:$0xff]  ;;  %v1453_v63 = vpack.c.bf16 %v480_v56, %v478_v55  ;;  %v479_v0 = vld [vmem:[%s1913_s11 + $0x5f0] sm:$0xff]  ;;  %v354_v1 = vld [vmem:[%s1913_s11 + $0x208] sm:$0xff]  ;;  %v1327_v5 = vpack.c.bf16 %v351_v61, %v349_v60 }
  0x85   : > { %v356_v2 = vld [vmem:[%s1913_s11 + $0x218] sm:$0xff]  ;;  %v482_v3 = vld [vmem:[%s1913_s11 + $0x608] sm:$0xff]  ;;  %v1455_v6 = vpack.c.bf16 %v479_v0, %v477_v62  ;;  %v353_v8 = vld [vmem:[%s1913_s11 + $0x200] sm:$0xff] }
  0x86   : > { %1308 = vmatpush1.bf16.msra.mxu1 %v1307_v7  ;;  %v484_v4 = vld [vmem:[%s1913_s11 + $0x618] sm:$0xff]  ;;  %v1329_v7 = vpack.c.bf16 %v356_v2, %v354_v1  ;;  %v481_v13 = vld [vmem:[%s1913_s11 + $0x600] sm:$0xff]  ;;  %v486_v17 = vld [vmem:[%s1913_s11 + $0x628] sm:$0xff] }
  0x87   : > { %1436 = vmatpush1.bf16.msra.mxu0 %v1435_v9  ;;  %1310 = vmatprep.subr.bf16.mxu1 %v1309_v10  ;;  %v355_v9 = vld [vmem:[%s1913_s11 + $0x210] sm:$0xff]  ;;  %v358_v10 = vld [vmem:[%s1913_s11 + $0x228] sm:$0xff]  ;;  %v360_v11 = vld [vmem:[%s1913_s11 + $0x238] sm:$0xff]  ;;  %v1457_v12 = vpack.c.bf16 %v484_v4, %v482_v3 }
  0x88   : > { %1438 = vmatprep.subr.bf16.mxu0 %v1437_v14  ;;  %v483_v14 = vld [vmem:[%s1913_s11 + $0x610] sm:$0xff]  ;;  %v233_v15 = vld [vmem:[#allocation2] sm:$0xff]  ;;  %v1331_v16 = vpack.c.bf16 %v355_v9, %v353_v8  ;;  %v488_v18 = vld [vmem:[%s1913_s11 + $0x638] sm:$0xff]  ;;  %v1333_v20 = vpack.c.bf16 %v360_v11, %v358_v10 }
  0x89   : > { %v237_v19 = vld [vmem:[#allocation2 + $0x20] sm:$0xff]  ;;  %v362_v24 = vld [vmem:[%s1913_s11 + $0x248] sm:$0xff]  ;;  %v364_v25 = vld [vmem:[%s1913_s11 + $0x258] sm:$0xff]  ;;  %v1459_v26 = vpack.c.bf16 %v483_v14, %v481_v13  ;;  %v1461_v28 = vpack.c.bf16 %v488_v18, %v486_v17 }
  0x8a   : > { %1312 = vmatpush1.bf16.msra.mxu1 %v1311_v21  ;;  %v357_v21 = vld [vmem:[%s1913_s11 + $0x220] sm:$0xff]  ;;  %v487_v30 = vld [vmem:[%s1913_s11 + $0x630] sm:$0xff]  ;;  %v240_v38 = vld [vmem:[#allocation2 + $0x38] sm:$0xff] }
  0x8b   : > { %1440 = vmatpush1.bf16.msra.mxu0 %v1439_v22  ;;  %1314 = vmatprep.subr.bf16.mxu1 %v1313_v23  ;;  %v359_v22 = vld [vmem:[%s1913_s11 + $0x230] sm:$0xff]  ;;  %v245_v23 = vld [vmem:[#allocation2 + $0x60] sm:$0xff]  ;;  %v366_v40 = vld [vmem:[%s1913_s11 + $0x268] sm:$0xff] }
  0x8c   : > { %1442 = vmatprep.subr.bf16.mxu0 %v1441_v27  ;;  %v244_v27 = vld [vmem:[#allocation2 + $0x58] sm:$0xff]  ;;  %v485_v29 = vld [vmem:[%s1913_s11 + $0x620] sm:$0xff]  ;;  %v1335_v31 = vpack.c.bf16 %v359_v22, %v357_v21  ;;  %v363_v36 = vld [vmem:[%s1913_s11 + $0x250] sm:$0xff] }
  0x8d   : > { %v361_v32 = vld [vmem:[%s1913_s11 + $0x240] sm:$0xff]  ;;  %v368_v41 = vld [vmem:[%s1913_s11 + $0x278] sm:$0xff]  ;;  %v1463_v42 = vpack.c.bf16 %v487_v30, %v485_v29  ;;  %v494_v48 = vld [vmem:[%s1913_s11 + $0x668] sm:$0xff] }
  0x8e   : > { %1316 = vmatpush1.bf16.msra.mxu1 %v1315_v33  ;;  %v490_v33 = vld [vmem:[%s1913_s11 + $0x648] sm:$0xff]  ;;  %v241_v37 = vld [vmem:[#allocation2 + $0x40] sm:$0xff]  ;;  %v496_v49 = vld [vmem:[%s1913_s11 + $0x678] sm:$0xff]  ;;  %v1341_v52 = vpack.c.bf16 %v368_v41, %v366_v40 }
  0x8f   : > { %1444 = vmatpush1.bf16.msra.mxu0 %v1443_v34  ;;  %1318 = vmatprep.subr.bf16.mxu1 %v1317_v35  ;;  %v492_v34 = vld [vmem:[%s1913_s11 + $0x658] sm:$0xff]  ;;  %v1337_v35 = vpack.c.bf16 %v364_v25, %v362_v24  ;;  %v489_v44 = vld [vmem:[%s1913_s11 + $0x640] sm:$0xff]  ;;  %v247_v50 = vld [vmem:[#allocation2 + $0x70] sm:$0xff] }
  0x90   : > { %1446 = vmatprep.subr.bf16.mxu0 %v1445_v39  ;;  %v252_v39 = vld [vmem:[#allocation2 + $0x98] sm:$0xff]  ;;  %v1465_v43 = vpack.c.bf16 %v492_v34, %v490_v33  ;;  %v365_v53 = vld [vmem:[%s1913_s11 + $0x260] sm:$0xff]  ;;  %v367_v54 = vld [vmem:[%s1913_s11 + $0x270] sm:$0xff] }
  0x91   : > { %v259_v55 = vld [vmem:[#allocation2 + $0xd0] sm:$0xff]  ;;  %v370_v56 = vld [vmem:[%s1913_s11 + $0x288] sm:$0xff]  ;;  %v493_v60 = vld [vmem:[%s1913_s11 + $0x660] sm:$0xff] }
  0x92   : > { %1320 = vmatpush1.bf16.msra.mxu1 %v1319_v45  ;;  %v491_v45 = vld [vmem:[%s1913_s11 + $0x650] sm:$0xff]  ;;  %v498_v0 = vld [vmem:[%s1913_s11 + $0x688] sm:$0xff]  ;;  %v500_v1 = vld [vmem:[%s1913_s11 + $0x698] sm:$0xff] }
  0x93   : > { %1448 = vmatpush1.bf16.msra.mxu0 %v1447_v46  ;;  %1322 = vmatprep.subr.bf16.mxu1 %v1321_v47  ;;  %v248_v46 = vld [vmem:[#allocation2 + $0x78] sm:$0xff]  ;;  %v1339_v47 = vpack.c.bf16 %v363_v36, %v361_v32  ;;  %v495_v61 = vld [vmem:[%s1913_s11 + $0x670] sm:$0xff]  ;;  %v254_v2 = vld [vmem:[#allocation2 + $0xa8] sm:$0xff]  ;;  %v1473_v11 = vpack.c.bf16 %v500_v1, %v498_v0 }
  0x94   : > { %1450 = vmatprep.subr.bf16.mxu0 %v1449_v51  ;;  %v251_v51 = vld [vmem:[#allocation2 + $0x90] sm:$0xff]  ;;  %v258_v3 = vld [vmem:[#allocation2 + $0xc8] sm:$0xff]  ;;  %v376_v9 = vld [vmem:[%s1913_s11 + $0x2b8] sm:$0xff]  ;;  %v1471_v10 = vpack.c.bf16 %v495_v61, %v493_v60 }
  0x95   : > { %v255_v62 = vld [vmem:[#allocation2 + $0xb0] sm:$0xff]  ;;  %v374_v8 = vld [vmem:[%s1913_s11 + $0x2a8] sm:$0xff]  ;;  %v504_v17 = vld [vmem:[%s1913_s11 + $0x6b8] sm:$0xff] }
  0x96   : > { %1324 = vmatpush1.bf16.msra.mxu1 %v1323_v57  ;;  %v372_v57 = vld [vmem:[%s1913_s11 + $0x298] sm:$0xff]  ;;  %v499_v13 = vld [vmem:[%s1913_s11 + $0x690] sm:$0xff]  ;;  %v262_v14 = vld [vmem:[#allocation2 + $0xe8] sm:$0xff] }
  0x97   : > { %1452 = vmatpush1.bf16.msra.mxu0 %v1451_v58  ;;  %1326 = vmatprep.subr.bf16.mxu1 %v1325_v59  ;;  %v1467_v58 = vpack.c.bf16 %v491_v45, %v489_v44  ;;  %v1469_v59 = vpack.c.bf16 %v496_v49, %v494_v48  ;;  %v1345_v4 = vpack.c.bf16 %v372_v57, %v370_v56  ;;  %v261_v18 = vld [vmem:[#allocation2 + $0xe0] sm:$0xff]  ;;  %v375_v22 = vld [vmem:[%s1913_s11 + $0x2b0] sm:$0xff]  ;;  %v378_v24 = vld [vmem:[%s1913_s11 + $0x2c8] sm:$0xff] }
  0x98   : > { %1454 = vmatprep.subr.bf16.mxu0 %v1453_v63  ;;  %v1343_v63 = vpack.c.bf16 %v367_v54, %v365_v53  ;;  %v373_v21 = vld [vmem:[%s1913_s11 + $0x2a0] sm:$0xff]  ;;  %v380_v25 = vld [vmem:[%s1913_s11 + $0x2d8] sm:$0xff]  ;;  %v503_v29 = vld [vmem:[%s1913_s11 + $0x6b0] sm:$0xff] }
  0x99   : > { %v269_v30 = vld [vmem:[#allocation2 + $0x120] sm:$0xff]  ;;  %v268_v32 = vld [vmem:[#allocation2 + $0x118] sm:$0xff]  ;;  %v1353_v34 = vpack.c.bf16 %v380_v25, %v378_v24  ;;  %v379_v36 = vld [vmem:[%s1913_s11 + $0x2d0] sm:$0xff] }
  0x9a   : > { %1328 = vmatpush1.bf16.msra.mxu1 %v1327_v5  ;;  %v369_v5 = vld [vmem:[%s1913_s11 + $0x280] sm:$0xff]  ;;  %v272_v33 = vld [vmem:[#allocation2 + $0x138] sm:$0xff]  ;;  %v275_v44 = vld [vmem:[#allocation2 + $0x150] sm:$0xff] }
  0x9b   : > { %1456 = vmatpush1.bf16.msra.mxu0 %v1455_v6  ;;  %1330 = vmatprep.subr.bf16.mxu1 %v1329_v7  ;;  %v371_v6 = vld [vmem:[%s1913_s11 + $0x290] sm:$0xff]  ;;  %v266_v7 = vld [vmem:[#allocation2 + $0x108] sm:$0xff]  ;;  %v276_v41 = vld [vmem:[#allocation2 + $0x158] sm:$0xff] }
  0x9c   : > { %1458 = vmatprep.subr.bf16.mxu0 %v1457_v12  ;;  %v497_v12 = vld [vmem:[%s1913_s11 + $0x680] sm:$0xff]  ;;  %v287_v45 = vld [vmem:[#allocation2 + $0x1b0] sm:$0xff]  ;;  %v386_v49 = vld [vmem:[%s1913_s11 + $0x308] sm:$0xff] }
  0x9d   : > { %595 = vmatmul.mubr.f32.vlgmr.msra.gmra.mrb[0].mxu1 %v233_v15  ;;  %v1347_v15 = vpack.c.bf16 %v371_v6, %v369_v5  ;;  %v383_v48 = vld [vmem:[%s1913_s11 + $0x2f0] sm:$0xff]  ;;  %v982_v53 = vld [vmem:[%s2309_s1] sm:$0xff]  ;;  %v985_v56 = vld [vmem:[%s2309_s1 + $0x18] sm:$0xff] }
  0x9e   : > { %821 = vmatmul.mubr.f32.vlgmr.msra.gmra.mrb[0].mxu0 %v237_v19  ;;  %1332 = vmatpush1.bf16.msra.mxu1 %v1331_v16  ;;  %v502_v16 = vld [vmem:[%s1913_s11 + $0x6a8] sm:$0xff]  ;;  %v265_v19 = vld [vmem:[#allocation2 + $0x100] sm:$0xff]  ;;  %v387_v60 = vld [vmem:[%s1913_s11 + $0x310] sm:$0xff] }
  0x9f   : > { %826 = vmatprep.mubr.f32.mxu0 %v245_v23  ;;  %1334 = vmatprep.subr.bf16.mxu1 %v1333_v20  ;;  %v1349_v20 = vpack.c.bf16 %v376_v9, %v374_v8  ;;  %v273_v23 = vld [vmem:[#allocation2 + $0x140] sm:$0xff]  ;;  %v286_v57 = vld [vmem:[#allocation2 + $0x1a8] sm:$0xff]  ;;  %v396_v9 = vld [vmem:[%s1913_s11 + $0x358] sm:$0xff] }
  0xa0   : > { %1460 = vmatpush1.bf16.msra.mxu0 %v1459_v26  ;;  %600 = vmatprep.mubr.f32.mxu1 %v241_v37  ;;  %v1475_v26 = vpack.c.bf16 %v499_v13, %v497_v12  ;;  %v280_v37 = vld [vmem:[#allocation2 + $0x178] sm:$0xff]  ;;  %v390_v61 = vld [vmem:[%s1913_s11 + $0x328] sm:$0xff]  ;;  %v389_v6 = vld [vmem:[%s1913_s11 + $0x320] sm:$0xff] }
  0xa1   : > { %1462 = vmatprep.subr.bf16.mxu0 %v1461_v28  ;;  %601 = vmatmul.mubr.f32.gmra.mrb[2].mxu1 %v240_v38  ;;  %v501_v28 = vld [vmem:[%s1913_s11 + $0x6a0] sm:$0xff]  ;;  %v382_v38 = vld [vmem:[%s1913_s11 + $0x2e8] sm:$0xff]  ;;  %v989_v12 = vld [vmem:[%s2309_s1 + $0x38] sm:$0xff] }
  0xa2   : > { %827 = vmatmul.mubr.f32.gmra.mrb[2].mxu0 %v244_v27  ;;  %1336 = vmatpush1.bf16.msra.mxu1 %v1335_v31  ;;  %v1477_v27 = vpack.c.bf16 %v504_v17, %v502_v16  ;;  %v1351_v31 = vpack.c.bf16 %v375_v22, %v373_v21  ;;  %v1479_v40 = vpack.c.bf16 %v503_v29, %v501_v28  ;;  %v983_v0 = vld [vmem:[%s2309_s1 + $0x8] sm:$0xff]  ;;  %v395_v16 = vld [vmem:[%s1913_s11 + $0x350] sm:$0xff]  ;;  %v253_v22 = vld [vmem:[#allocation2 + $0xa0] sm:$0xff] }
  0xa3   : > { %832 = vmatprep.mubr.f32.mxu0 %v252_v39  ;;  %1338 = vmatprep.subr.bf16.mxu1 %v1337_v35  ;;  %v377_v35 = vld [vmem:[%s1913_s11 + $0x2c0] sm:$0xff]  ;;  %v384_v39 = vld [vmem:[%s1913_s11 + $0x2f8] sm:$0xff]  ;;  %v394_v8 = vld [vmem:[%s1913_s11 + $0x348] sm:$0xff] }
  0xa4   : > { %1464 = vmatpush1.bf16.msra.mxu0 %v1463_v42  ;;  %606 = vmatprep.mubr.f32.mxu1 %v248_v46  ;;  %v279_v42 = vld [vmem:[#allocation2 + $0x170] sm:$0xff]  ;;  %v1357_v46 = vpack.c.bf16 %v384_v39, %v382_v38  ;;  %v246_v13 = vld [vmem:[#allocation2 + $0x68] sm:$0xff]  ;;  %v397_v24 = vld [vmem:[%s1913_s11 + $0x360] sm:$0xff] }
  0xa5   : > { %1466 = vmatprep.subr.bf16.mxu0 %v1465_v43  ;;  %607 = vmatmul.mubr.f32.gmra.mrb[4].mxu1 %v247_v50  ;;  %v1355_v43 = vpack.c.bf16 %v379_v36, %v377_v35  ;;  %v388_v50 = vld [vmem:[%s1913_s11 + $0x318] sm:$0xff]  ;;  %v398_v17 = vld [vmem:[%s1913_s11 + $0x368] sm:$0xff]  ;;  %v399_v25 = vld [vmem:[%s1913_s11 + $0x370] sm:$0xff] }
  0xa6   : > { %833 = vmatmul.mubr.f32.gmra.mrb[4].mxu0 %v251_v51  ;;  %1340 = vmatpush1.bf16.msra.mxu1 %v1339_v47  ;;  %v381_v47 = vld [vmem:[%s1913_s11 + $0x2e0] sm:$0xff]  ;;  %v984_v51 = vld [vmem:[%s2309_s1 + $0x10] sm:$0xff]  ;;  %v1047_v21 = vld [vmem:[%s2310_s2 + $0x8] sm:$0xff]  ;;  %v1375_v29 = vpack.c.bf16 %v399_v25, %v397_v24 }
  0xa7   : > { %838 = vmatprep.mubr.f32.mxu0 %v259_v55  ;;  %1342 = vmatprep.subr.bf16.mxu1 %v1341_v52  ;;  %v283_v52 = vld [vmem:[#allocation2 + $0x190] sm:$0xff]  ;;  %v1359_v54 = vpack.c.bf16 %v383_v48, %v381_v47  ;;  %v282_v55 = vld [vmem:[#allocation2 + $0x188] sm:$0xff]  ;;  %v1046_v28 = vld [vmem:[%s2310_s2] sm:$0xff] }
  0xa8   : > { %1468 = vmatpush1.bf16.msra.mxu0 %v1467_v58  ;;  %612 = vmatprep.mubr.f32.mxu1 %v255_v62  ;;  %v1361_v58 = vpack.c.bf16 %v388_v50, %v386_v49  ;;  %v392_v62 = vld [vmem:[%s1913_s11 + $0x338] sm:$0xff]  ;;  %v406_v35 = vld [vmem:[%s1913_s11 + $0x3a8] sm:$0xff] }
  0xa9   : > { %1470 = vmatprep.subr.bf16.mxu0 %v1469_v59  ;;  %613 = vmatmul.mubr.f32.gmra.mrb[6].mxu1 %v254_v2  ;;  %v385_v59 = vld [vmem:[%s1913_s11 + $0x300] sm:$0xff]  ;;  %v987_v2 = vld [vmem:[%s2309_s1 + $0x28] sm:$0xff]  ;;  %v1365_v5 = vpack.c.bf16 %v392_v62, %v390_v61  ;;  %v408_v36 = vld [vmem:[%s1913_s11 + $0x3b8] sm:$0xff] }
  0xaa   : > { %839 = vmatmul.mubr.f32.gmra.mrb[6].mxu0 %v258_v3  ;;  %1344 = vmatpush1.bf16.msra.mxu1 %v1343_v63  ;;  %v236_v63 = vld [vmem:[#allocation2 + $0x18] sm:$0xff]  ;;  %v1363_v1 = vpack.c.bf16 %v387_v60, %v385_v59  ;;  %v1738_v3 = vmov 0.0   ;;  %v1051_v39 = vld [vmem:[%s2310_s2 + $0x28] sm:$0xff]  ;;  %v413_v59 = vld [vmem:[%s1913_s11 + $0x3e0] sm:$0xff] }
  0xab   : > { %844 = vmatprep.mubr.f32.mxu0 %v266_v7  ;;  %1346 = vmatprep.subr.bf16.mxu1 %v1345_v4  ;;  %v239_v4 = vld [vmem:[#allocation2 + $0x30] sm:$0xff]  ;;  %v1053_v48 = vld [vmem:[%s2310_s2 + $0x38] sm:$0xff]  ;;  %v274_v49 = vld [vmem:[#allocation2 + $0x148] sm:$0xff] }
  0xac   : > { %1472 = vmatpush1.bf16.msra.mxu0 %v1471_v10  ;;  %618 = vmatprep.mubr.f32.mxu1 %v262_v14  ;;  %v391_v7 = vld [vmem:[%s1913_s11 + $0x330] sm:$0xff]  ;;  %v986_v10 = vld [vmem:[%s2309_s1 + $0x20] sm:$0xff]  ;;  %v1369_v14 = vpack.c.bf16 %v396_v9, %v394_v8  ;;  %v288_v62 = vld [vmem:[#allocation2 + $0x1b8] sm:$0xff] }
  0xad   : > { %1474 = vmatprep.subr.bf16.mxu0 %v1473_v11  ;;  %619 = vmatmul.mubr.f32.gmra.mrb[8].mxu1 %v261_v18  ;;  %v1367_v11 = vpack.c.bf16 %v391_v7, %v389_v6  ;;  %v400_v18 = vld [vmem:[%s1913_s11 + $0x378] sm:$0xff]  ;;  %v415_v60 = vld [vmem:[%s1913_s11 + $0x3f0] sm:$0xff]  ;;  %v270_v9 = vld [vmem:[#allocation2 + $0x128] sm:$0xff] }
  0xae   : > { %845 = vmatmul.mubr.f32.gmra.mrb[8].mxu0 %v265_v19  ;;  %1348 = vmatpush1.bf16.msra.mxu1 %v1347_v15  ;;  %v393_v15 = vld [vmem:[%s1913_s11 + $0x340] sm:$0xff]  ;;  %v988_v19 = vld [vmem:[%s2309_s1 + $0x30] sm:$0xff]  ;;  %v1391_v61 = vpack.c.bf16 %v415_v60, %v413_v59  ;;  %v256_v6 = vld [vmem:[#allocation2 + $0xb8] sm:$0xff] }
  0xaf   : > { %850 = vmatprep.mubr.f32.mxu0 %v273_v23  ;;  %1350 = vmatprep.subr.bf16.mxu1 %v1349_v20  ;;  %v1371_v20 = vpack.c.bf16 %v395_v16, %v393_v15  ;;  %v1373_v23 = vpack.c.bf16 %v400_v18, %v398_v17  ;;  %v264_v7 = vld [vmem:[#allocation2 + $0xf8] sm:$0xff]  ;;  %v271_v8 = vld [vmem:[#allocation2 + $0x130] sm:$0xff] }
  0xb0   : > { %1476 = vmatpush1.bf16.msra.mxu0 %v1475_v26  ;;  %624 = vmatprep.mubr.f32.mxu1 %v269_v30  ;;  %v402_v26 = vld [vmem:[%s1913_s11 + $0x388] sm:$0xff]  ;;  %v1049_v30 = vld [vmem:[%s2310_s2 + $0x18] sm:$0xff] }
  0xb1   : > { %1478 = vmatprep.subr.bf16.mxu0 %v1477_v27  ;;  %625 = vmatmul.mubr.f32.gmra.mrb[10].mxu1 %v268_v32  ;;  %v404_v27 = vld [vmem:[%s1913_s11 + $0x398] sm:$0xff] }
  0xb2   : > { %851 = vmatmul.mubr.f32.gmra.mrb[10].mxu0 %v272_v33  ;;  %1352 = vmatpush1.bf16.msra.mxu1 %v1351_v31  ;;  %v260_v31 = vld [vmem:[#allocation2 + $0xd8] sm:$0xff]  ;;  %v1377_v32 = vpack.c.bf16 %v404_v27, %v402_v26  ;;  %v401_v33 = vld [vmem:[%s1913_s11 + $0x380] sm:$0xff] }
  0xb3   : > { %856 = vmatprep.mubr.f32.mxu0 %v280_v37  ;;  %1354 = vmatprep.subr.bf16.mxu1 %v1353_v34  ;;  %v403_v34 = vld [vmem:[%s1913_s11 + $0x390] sm:$0xff] }
  0xb4   : > { %1480 = vmatpush1.bf16.msra.mxu0 %v1479_v40  ;;  %630 = vmatprep.mubr.f32.mxu1 %v276_v41  ;;  %v1048_v37 = vld [vmem:[%s2310_s2 + $0x10] sm:$0xff]  ;;  %v1379_v38 = vpack.c.bf16 %v403_v34, %v401_v33  ;;  %v1381_v41 = vpack.c.bf16 %v408_v36, %v406_v35 }
  0xb5   : > { %631 = vmatmul.mubr.f32.gmra.mrb[12].mxu1 %v275_v44  ;;  %1002 = vperm.xlu1 %1599, %v984_v51   ;;  %v267_v40 = vld [vmem:[#allocation2 + $0x110] sm:$0xff]  ;;  %v410_v44 = vld [vmem:[%s1913_s11 + $0x3c8] sm:$0xff]  ;;  %v409_v51 = vld [vmem:[%s1913_s11 + $0x3c0] sm:$0xff] }
  0xb6   : > { %857 = vmatmul.mubr.f32.gmra.mrb[12].mxu0 %v279_v42  ;;  %1356 = vmatpush1.bf16.msra.mxu1 %v1355_v43  ;;  %v405_v42 = vld [vmem:[%s1913_s11 + $0x3a0] sm:$0xff]  ;;  %v407_v43 = vld [vmem:[%s1913_s11 + $0x3b0] sm:$0xff] }
  0xb7   : > { %862 = vmatprep.mubr.f32.mxu0 %v287_v45  ;;  %1358 = vmatprep.subr.bf16.mxu1 %v1357_v46  ;;  %v412_v45 = vld [vmem:[%s1913_s11 + $0x3d8] sm:$0xff]  ;;  %v1050_v46 = vld [vmem:[%s2310_s2 + $0x20] sm:$0xff]  ;;  %v1383_v47 = vpack.c.bf16 %v407_v43, %v405_v42 }
  0xb8   : > { %636 = vmatprep.mubr.f32.mxu1 %v283_v52  ;;  %992 = vperm.xlu0 %1598, %v982_v53   ;;  %v1385_v50 = vpack.c.bf16 %v412_v45, %v410_v44  ;;  %v411_v52 = vld [vmem:[%s1913_s11 + $0x3d0] sm:$0xff]  ;;  %v414_v53 = vld [vmem:[%s1913_s11 + $0x3e8] sm:$0xff] }
  0xb9   : > { %637 = vmatmul.mubr.f32.gmra.mrb[14].mxu1 %v282_v55  ;;  %1007 = vperm.xlu1 %1599, %v985_v56   ;;  %v1052_v55 = vld [vmem:[%s2310_s2 + $0x30] sm:$0xff]  ;;  %v1387_v56 = vpack.c.bf16 %v411_v52, %v409_v51 }
  0xba   : > { %863 = vmatmul.mubr.f32.gmra.mrb[14].mxu0 %v286_v57  ;;  %1360 = vmatpush1.bf16.msra.mxu1 %v1359_v54  ;;  %v416_v54 = vld [vmem:[%s1913_s11 + $0x3f8] sm:$0xff]  ;;  %v281_v57 = vld [vmem:[#allocation2 + $0x180] sm:$0xff]  ;;  %s1249_s11 = sshll.u32 %s1909_s23, 7 }
  0xbb   : > { %933 = vmatprep.mubr.f32.mxu0 %v1738_v3  ;;  %1362 = vmatprep.subr.bf16.mxu1 %v1361_v58  ;;  %v1389_v58 = vpack.c.bf16 %v416_v54, %v414_v53  ;;  %s2224_s9 = scalar_lea.vmem [#allocation7], %s1249_s11 }
  0xbc   : > { %707 = vmatprep.mubr.f32.mxu1 %v236_v63  ;;  %997 = vperm.xlu0 %1598, %v983_v0   ;;  %v235_v63 = vld [vmem:[#allocation2 + $0x10] sm:$0xff]  ;;  %s1156_s25 = sshll.u32 %s2224_s9, 4  ;;  %s2263_s25 = int_to_ptr.vmem [resolvable:$true] %s1156_s25 }
  0xbd   : > { %1017 = vperm.xlu1 %1599, %v987_v2   ;;  %v243_v0 = vld [vmem:[#allocation2 + $0x50] sm:$0xff]  ;;  %v250_v2 = vld [vmem:[#allocation2 + $0x88] sm:$0xff]  ;;  %s1658_s12 = scalar_lea.vmem %s2263_s25, 2048  ;;  %p1665_p3 = scmp.lt.s32.totalorder %s2263_s25, %s1663_s5 }
  0xbe   : > { %1250 = vmatmul.mubr.msk.f32.vlgmr.msra.gmra.mrb[0].mxu0 %vm505_vm0, %v239_v4  ;;  %1364 = vmatpush1.bf16.msra.mxu1 %v1363_v1  ;;  %v242_v1 = vld [vmem:[#allocation2 + $0x48] sm:$0xff]  ;;  %v249_v4 = vld [vmem:[#allocation2 + $0x80] sm:$0xff]  ;;  %p1659_p7 = scmp.ne.s32.totalorder %s2263_s25, %s1658_s12  ;;  %p1666_p8 = scmp.lt.s32.totalorder %s1664_s20, %s1658_s12 }
  0xbf   : > { %939 = vmatprep.mubr.f32.mxu0 %v1738_v3  ;;  %1366 = vmatprep.subr.bf16.mxu1 %v1365_v5  ;;  %v257_v5 = vld [vmem:[#allocation2 + $0xc0] sm:$0xff] }
  0xc0   : > { %1012 = vperm.xlu0 %1598, %v986_v10   ;;  %v278_v10 = vld [vmem:[#allocation2 + $0x168] sm:$0xff]  ;;  %p1660_p10 = pnand %p1659_p7, %p2330_p9  ;;  %p1667_p5 = por %p1666_p8, %p1665_p3 }
  0xc1   : > { %1027 = vperm.xlu1 %1599, %v989_v12   ;;  %v285_v12 = vld [vmem:[#allocation2 + $0x1a0] sm:$0xff] }
  0xc2   : > { %1251 = vmatmul.mubr.msk.f32.gmra.mrb[2].mxu0 %vm505_vm0, %v246_v13  ;;  %1368 = vmatpush1.bf16.msra.mxu1 %v1367_v11  ;;  %v277_v11 = vld [vmem:[#allocation2 + $0x160] sm:$0xff]  ;;  %v284_v13 = vld [vmem:[#allocation2 + $0x198] sm:$0xff]  ;;  %p1661_p1 = pneg %p1660_p10 }
  0xc3   : > { %945 = vmatprep.mubr.f32.mxu0 %v1738_v3  ;;  %1370 = vmatprep.subr.bf16.mxu1 %v1369_v14 }
  0xc4   : > { %1022 = vperm.xlu0 %1598, %v988_v19   ;;  %p1668_p11 = pnand %p1667_p5, %p1661_p1 }
  0xc5   : > { %1061 = vperm.xlu1 %1599, %v1047_v21  }
  0xc6   : > { %1252 = vmatmul.mubr.msk.f32.gmra.mrb[4].mxu0 %vm505_vm0, %v253_v22  ;;  %1372 = vmatpush1.bf16.msra.mxu1 %v1371_v20 }
  0xc7   : > { %951 = vmatprep.mubr.f32.mxu0 %v1738_v3  ;;  %1374 = vmatprep.subr.bf16.mxu1 %v1373_v23 }
  0xc8   : > { %1056 = vperm.xlu0 %1598, %v1046_v28  }
  0xc9   : > { %1071 = vperm.xlu1 %1599, %v1049_v30  }
  0xca   : > { %1253 = vmatmul.mubr.msk.f32.gmra.mrb[6].mxu0 %vm505_vm0, %v260_v31  ;;  %1376 = vmatpush1.bf16.msra.mxu1 %v1375_v29 }
  0xcb   : > { %957 = vmatprep.mubr.f32.mxu0 %v1738_v3  ;;  %1378 = vmatprep.subr.bf16.mxu1 %v1377_v32 }
  0xcc   : > { %1066 = vperm.xlu0 %1598, %v1048_v37  }
  0xcd   : > { %1081 = vperm.xlu1 %1599, %v1051_v39  }
  0xce   : > { %1254 = vmatmul.mubr.msk.f32.gmra.mrb[8].mxu0 %vm505_vm0, %v267_v40  ;;  %1380 = vmatpush1.bf16.msra.mxu1 %v1379_v38 }
  0xcf   : > { %963 = vmatprep.mubr.f32.mxu0 %v1738_v3  ;;  %1382 = vmatprep.subr.bf16.mxu1 %v1381_v41 }
  0xd0   : > { %1076 = vperm.xlu0 %1598, %v1050_v46  }
  0xd1   : > { %1091 = vperm.xlu1 %1599, %v1053_v48  }
  0xd2   : > { %1255 = vmatmul.mubr.msk.f32.gmra.mrb[10].mxu0 %vm505_vm0, %v274_v49  ;;  %1384 = vmatpush1.bf16.msra.mxu1 %v1383_v47 }
  0xd3   : > { %969 = vmatprep.mubr.f32.mxu0 %v1738_v3  ;;  %1386 = vmatprep.subr.bf16.mxu1 %v1385_v50 }
  0xd4   : > { %1086 = vperm.xlu0 %1598, %v1052_v55  }
  0xd6   : > { %1256 = vmatmul.mubr.msk.f32.gmra.mrb[12].mxu0 %vm505_vm0, %v281_v57  ;;  %1388 = vmatpush1.bf16.msra.mxu1 %v1387_v56 }
  0xd7   : > { %975 = vmatprep.mubr.f32.mxu0 %v1738_v3  ;;  %1390 = vmatprep.subr.bf16.mxu1 %v1389_v58  ;;  %v263_v3 = vld [vmem:[#allocation2 + $0xf0] sm:$0xff] }
  0xda   : > { %1257 = vmatmul.mubr.msk.f32.gmra.mrb[14].mxu0 %vm505_vm0, %v288_v62  ;;  %1392 = vmatpush1.bf16.msra.mxu1 %v1391_v61 }
  0xdd   : > { %708 = vmatmul.mubr.f32.vlgmr.msra.gmra.mrb[0].mxu1 %v235_v63 }
  0xde   : > { %713 = vmatprep.mubr.f32.mxu1 %v243_v0 }
  0xe1   : > { %714 = vmatmul.mubr.f32.gmra.mrb[2].mxu1 %v242_v1 }
  0xe2   : > { %719 = vmatprep.mubr.f32.mxu1 %v250_v2 }
  0xe5   : > { %720 = vmatmul.mubr.f32.gmra.mrb[4].mxu1 %v249_v4 }
  0xe6   : > { %725 = vmatprep.mubr.f32.mxu1 %v257_v5 }
  0xe9   : > { %726 = vmatmul.mubr.f32.gmra.mrb[6].mxu1 %v256_v6 }
  0xea   : > { %731 = vmatprep.mubr.f32.mxu1 %v264_v7 }
  0xed   : > { %732 = vmatmul.mubr.f32.gmra.mrb[8].mxu1 %v263_v3 }
  0xee   : > { %737 = vmatprep.mubr.f32.mxu1 %v271_v8 }
  0xf1   : > { %738 = vmatmul.mubr.f32.gmra.mrb[10].mxu1 %v270_v9 }
  0xf2   : > { %743 = vmatprep.mubr.f32.mxu1 %v278_v10 }
  0xf5   : > { %744 = vmatmul.mubr.f32.gmra.mrb[12].mxu1 %v277_v11 }
  0xf6   : > { %749 = vmatprep.mubr.f32.mxu1 %v285_v12 }
  0xf9   : > { %750 = vmatmul.mubr.f32.gmra.mrb[14].mxu1 %v284_v13 }
 0x134   : > { %v1003_v23 = vpop.permute.xlu1 %1002 }
 0x137   : > { %v993_v20 = vpop.permute.xlu0 %992 }
 0x138   : > { %v1008_v28 = vpop.permute.xlu1 %1007 }
 0x13b   : > { %v998_v25 = vpop.permute.xlu0 %997 }
 0x13c   : > { %v2213_v33 = vpop.permute.xlu1 %1017 }
 0x13f   : > { %v2207_v30 = vpop.permute.xlu0 %1012 }
 0x140   : > { %v2221_v40 = vpop.permute.xlu1 %1027 }
 0x143   : > { %v2217_v35 = vpop.permute.xlu0 %1022 }
 0x144   : > { %v1062_v53 = vpop.permute.xlu1 %1061 }
 0x147   : > { %v1057_v43 = vpop.permute.xlu0 %1056 }
 0x148   : > { %v1072_v11 = vpop.permute.xlu1 %1071 }
 0x14b   : > { %v1067_v0 = vpop.permute.xlu0 %1066 }
 0x191   : > { %v935_v14 = vpop.f32.mrb[0].mxu0 }
 0x192   : > { %v937_v15 = vpop.f32.mrb[1].mxu0 }
 0x195   : > { %v941_v16 = vpop.f32.mrb[2].mxu0 }
 0x196   : > { %v943_v17 = vpop.f32.mrb[3].mxu0 }
 0x199   : > { %v947_v18 = vpop.f32.mrb[4].mxu0 }
 0x19a   : > { %v949_v19 = vpop.f32.mrb[5].mxu0 }
 0x19d   : > { %v953_v21 = vpop.f32.mrb[6].mxu0 }
 0x19e   : > { %v955_v22 = vpop.f32.mrb[7].mxu0 }
 0x1a1   : > { %v2199_v24 = vpop.f32.mrb[8].mxu0 }
 0x1a2   : > { %v2201_v26 = vpop.f32.mrb[9].mxu0 }
 0x1a5   : > { %v2203_v27 = vpop.f32.mrb[10].mxu0 }
 0x1a6   : > { %v2205_v29 = vpop.f32.mrb[11].mxu0 }
 0x1a9   : > { %v2209_v31 = vpop.f32.mrb[12].mxu0 }
 0x1aa   : > { %v2211_v32 = vpop.f32.mrb[13].mxu0 }
 0x1ad   : > { %v2215_v34 = vpop.f32.mrb[14].mxu0 }
 0x1ae   : > { %v2219_v36 = vpop.f32.mrb[15].mxu0 }
 0x1b0   : > { %v709_v37 = vpop.f32.mrb[0].mxu1 }
 0x1b1   : > { %v1481_v38 = vadd.f32 %v935_v14, %v709_v37  ;;  %v711_v39 = vpop.f32.mrb[1].mxu1 }
 0x1b2   : > { %v1482_v41 = vadd.f32 %v937_v15, %v711_v39 }
 0x1b3   : > { %v1030_v42 = vmul.f32 %v1481_v38, %v993_v20 }
 0x1b4   : > { %v1031_v44 = vmul.f32 %v1482_v41, %v993_v20  ;;  %v715_v45 = vpop.f32.mrb[2].mxu1 }
 0x1b5   : > { %v1094_v46 = vadd.f32 %v1057_v43, %v1030_v42  ;;  %v1483_v47 = vadd.f32 %v941_v16, %v715_v45  ;;  %v717_v48 = vpop.f32.mrb[3].mxu1 }
 0x1b6   : > { %v1095_v49 = vadd.f32 %v1057_v43, %v1031_v44  ;;  %v1484_v50 = vadd.f32 %v943_v17, %v717_v48  ;;  %v1082_v43 = vpop.permute.xlu1 %1081 }
 0x1b7   : > { %v1110_v51 = vmax.f32 %v1094_v46, 0.0  ;;  %v1032_v52 = vmul.f32 %v1483_v47, %v998_v25 }
 0x1b8   : > { %v1111_v54 = vmax.f32 %v1095_v49, 0.0  ;;  %v1033_v55 = vmul.f32 %v1484_v50, %v998_v25  ;;  %v721_v56 = vpop.f32.mrb[4].mxu1 }
 0x1b9   : > { %1126 = vst [vmem:[%s2224_s9] sm:$0xff] %v1110_v51  ;;  %v1096_v57 = vadd.f32 %v1062_v53, %v1032_v52  ;;  %v1485_v58 = vadd.f32 %v947_v18, %v721_v56  ;;  %v723_v59 = vpop.f32.mrb[5].mxu1 }
 0x1ba   : > { %1127 = vst [vmem:[%s2224_s9 + $0x8] sm:$0xff] %v1111_v54  ;;  %v1097_v60 = vadd.f32 %v1062_v53, %v1033_v55  ;;  %v1486_v61 = vadd.f32 %v949_v19, %v723_v59 }
 0x1bb   : > { %v1112_v62 = vmax.f32 %v1096_v57, 0.0  ;;  %v1034_v63 = vmul.f32 %v1485_v58, %v1003_v23 }
 0x1bc   : > { %v1113_v1 = vmax.f32 %v1097_v60, 0.0  ;;  %v1035_v2 = vmul.f32 %v1486_v61, %v1003_v23  ;;  %v727_v4 = vpop.f32.mrb[6].mxu1 }
 0x1bd   : > { %1128 = vst [vmem:[%s2224_s9 + $0x10] sm:$0xff] %v1112_v62  ;;  %v1098_v5 = vadd.f32 %v1067_v0, %v1034_v63  ;;  %v1487_v6 = vadd.f32 %v953_v21, %v727_v4  ;;  %v729_v7 = vpop.f32.mrb[7].mxu1 }
 0x1be   : > { %1129 = vst [vmem:[%s2224_s9 + $0x18] sm:$0xff] %v1113_v1  ;;  %v1099_v3 = vadd.f32 %v1067_v0, %v1035_v2  ;;  %v1488_v8 = vadd.f32 %v955_v22, %v729_v7  ;;  %v1077_v22 = vpop.permute.xlu0 %1076 }
 0x1bf   : > { %v1114_v9 = vmax.f32 %v1098_v5, 0.0  ;;  %v1036_v10 = vmul.f32 %v1487_v6, %v1008_v28 }
 0x1c0   : > { %v1115_v12 = vmax.f32 %v1099_v3, 0.0  ;;  %v1037_v13 = vmul.f32 %v1488_v8, %v1008_v28  ;;  %v733_v14 = vpop.f32.mrb[8].mxu1 }
 0x1c1   : > { %1130 = vst [vmem:[%s2224_s9 + $0x20] sm:$0xff] %v1114_v9  ;;  %v1100_v15 = vadd.f32 %v1072_v11, %v1036_v10  ;;  %v1489_v16 = vadd.f32 %v2199_v24, %v733_v14  ;;  %v735_v17 = vpop.f32.mrb[9].mxu1 }
 0x1c2   : > { %1131 = vst [vmem:[%s2224_s9 + $0x28] sm:$0xff] %v1115_v12  ;;  %v1101_v18 = vadd.f32 %v1072_v11, %v1037_v13  ;;  %v1490_v19 = vadd.f32 %v2201_v26, %v735_v17  ;;  %v1087_v51 = vpop.permute.xlu0 %1086 }
 0x1c3   : > { %v1116_v20 = vmax.f32 %v1100_v15, 0.0  ;;  %v1038_v21 = vmul.f32 %v1489_v16, %v2207_v30 }
 0x1c4   : > { %v1117_v23 = vmax.f32 %v1101_v18, 0.0  ;;  %v1039_v25 = vmul.f32 %v1490_v19, %v2207_v30  ;;  %v739_v28 = vpop.f32.mrb[10].mxu1 }
 0x1c5   : > { %1132 = vst [vmem:[%s2224_s9 + $0x30] sm:$0xff] %v1116_v20  ;;  %v1102_v37 = vadd.f32 %v1077_v22, %v1038_v21  ;;  %v1491_v38 = vadd.f32 %v2203_v27, %v739_v28  ;;  %v741_v24 = vpop.f32.mrb[11].mxu1 }
 0x1c6   : > { %1133 = vst [vmem:[%s2224_s9 + $0x38] sm:$0xff] %v1117_v23  ;;  %v1103_v39 = vadd.f32 %v1077_v22, %v1039_v25  ;;  %v1492_v41 = vadd.f32 %v2205_v29, %v741_v24 }
 0x1c7   : > { %v1118_v26 = vmax.f32 %v1102_v37, 0.0  ;;  %v1040_v42 = vmul.f32 %v1491_v38, %v2213_v33 }
 0x1c8   : > { %v1119_v44 = vmax.f32 %v1103_v39, 0.0  ;;  %v1041_v45 = vmul.f32 %v1492_v41, %v2213_v33  ;;  %v745_v30 = vpop.f32.mrb[12].mxu1 }
 0x1c9   : > { %1134 = vst [vmem:[%s2224_s9 + $0x40] sm:$0xff] %v1118_v26  ;;  %v1104_v46 = vadd.f32 %v1082_v43, %v1040_v42  ;;  %v1493_v47 = vadd.f32 %v2209_v31, %v745_v30  ;;  %v747_v27 = vpop.f32.mrb[13].mxu1 }
 0x1ca   : > { %1135 = vst [vmem:[%s2224_s9 + $0x48] sm:$0xff] %v1119_v44  ;;  %v1105_v48 = vadd.f32 %v1082_v43, %v1041_v45  ;;  %v1494_v49 = vadd.f32 %v2211_v32, %v747_v27 }
 0x1cb   : > { %v1120_v29 = vmax.f32 %v1104_v46, 0.0  ;;  %v1042_v50 = vmul.f32 %v1493_v47, %v2217_v35 }
 0x1cc   : > { %v1121_v52 = vmax.f32 %v1105_v48, 0.0  ;;  %v1043_v33 = vmul.f32 %v1494_v49, %v2217_v35  ;;  %v751_v53 = vpop.f32.mrb[14].mxu1  ;;  %v1092_v35 = vpop.permute.xlu1 %1091 }
 0x1cd   : > { %1136 = vst [vmem:[%s2224_s9 + $0x50] sm:$0xff] %v1120_v29  ;;  %v1106_v54 = vadd.f32 %v1087_v51, %v1042_v50  ;;  %v1495_v31 = vadd.f32 %v2215_v34, %v751_v53  ;;  %v753_v55 = vpop.f32.mrb[15].mxu1 }
 0x1ce   : > { %1137 = vst [vmem:[%s2224_s9 + $0x58] sm:$0xff] %v1121_v52  ;;  %v1107_v56 = vadd.f32 %v1087_v51, %v1043_v33  ;;  %v1496_v32 = vadd.f32 %v2219_v36, %v753_v55 }
 0x1cf   : > { %v1122_v57 = vmax.f32 %v1106_v54, 0.0  ;;  %v1044_v58 = vmul.f32 %v1495_v31, %v2221_v40 }
 0x1d0   : > { %v1123_v59 = vmax.f32 %v1107_v56, 0.0  ;;  %v1045_v60 = vmul.f32 %v1496_v32, %v2221_v40 }
 0x1d1   : > { %1138 = vst [vmem:[%s2224_s9 + $0x60] sm:$0xff] %v1122_v57  ;;  %v1108_v34 = vadd.f32 %v1092_v35, %v1044_v58 }
 0x1d2   : > { %1139 = vst [vmem:[%s2224_s9 + $0x68] sm:$0xff] %v1123_v59  ;;  %v1109_v61 = vadd.f32 %v1092_v35, %v1045_v60 }
 0x1d3   : > { %v1124_v36 = vmax.f32 %v1108_v34, 0.0 }
 0x1d4   : > { %v1125_v62 = vmax.f32 %v1109_v61, 0.0 }
 0x1d5   : > { %1140 = vst [vmem:[%s2224_s9 + $0x70] sm:$0xff] %v1124_v36 }
 0x1d6   : > { %1141 = vst [vmem:[%s2224_s9 + $0x78] sm:$0xff] %v1125_v62 }
 0x1d7   : > { %1671 = shalt.err (!%p1668_p11)
}
 0x1d8   : > { %s1672_s22 = scalar_lea.hbm %s2261_s10, 2048  ;;  %s1676_s26 = scalar_lea.hbm %s2312_s4, 8192 }
 0x1d9   : > { %p1673_p13 = scmp.ne.s32.totalorder %s2261_s10, %s1672_s22  ;;  %p1677_p12 = scmp.lt.u32.totalorder %s2261_s10, %s2312_s4 }
 0x1da   : > { %p1678_p0 = scmp.lt.u32.totalorder %s1676_s26, %s1672_s22  ;;  %p1680_p7 = scmp.lt.u32.totalorder %s1672_s22, %s2261_s10 }
 0x1db   : > { %p1674_p2 = pnand %p1673_p13, %p2330_p9 }
 0x1dc   : > { %p1679_p4 = por %p1678_p0, %p1677_p12 }
 0x1dd   : > { %p1675_p6 = pneg %p1674_p2 }
 0x1de   : > { %p1681_p10 = por %p1680_p7, %p1679_p4 }
 0x1e0   : > { %p1682_p1 = pnand %p1681_p10, %p1675_p6 }
 0x1e2   : > { %1685 = shalt.err (!%p1682_p1)
}
 0x1e3   : > { %s1740_s9 = smov 256   ;;  %s1741_s14 = smov 1024  }
 0x1e4   : > { %s1742_s6 = smov 16  }
 0x1e5   : > { %1537 = dma.vmem_to_hbm [thread:$0]  (%p2330_p9), %s2263_s25, 2048, %s2261_s10, %s1143_s19, %s1740_s9, %s1741_s14, %s1742_s6  }
 0x1e6 PF: > { %p1554_p3 = scmp.ge.s32.totalorder %s1728_s18, 2  ;;  %s1171_s7 = sand.u32 1, %s1716_s15  }
 0x1e7   : > { %p2331_p8 = scmp.ne.s32.totalorder %s2320_s28, 0  ;;  %s1172_s12 = scalar_lea.sflag [#allocation4], %s1171_s7 }
 0x1e9   : > { %p1548_p5 = pnand %p1554_p3, %p2331_p8 }
 0x1eb   : > { %1711 = dma.done.wait (!%p1548_p5), %s1172_s12, 2048  }
 0x1ec   : > { %1713 = vsyncadd (!%p1548_p5), %s1172_s12, 4294965248  ;;  %p18_p11 = scmp.ge.s32.totalorder %s1793_s21, 6   ;;  %s2332_s15 = smov %s1720_s16 }
 0x1ed   : > { %s2333_s16 = smov %s1724_s17  ;;  %s2334_s17 = smov %s1805_s24 }
 0x1ee   : > { %s2335_s18 = smov %s1793_s21  ;;  %20 = sbr.rel (!%p18_p11) target bundleno = 6 (0x6), region = 86 }
 0x1f5   :  { %1177 = vsyncpa [#allocation3], 1 }
 0x1f6   :  { %1179 = vsyncpa [#allocation3 + $0x1], 1 }
 0x1f7   :  { %1180 = vsyncpa [#allocation6], 1 }
 0x1f8   :  { %1182 = vsyncpa [#allocation6 + $0x1], 1 }
 0x1f9   :  { %1183 = vsyncpa [#allocation4], 1 }
 0x1fa   :  { %1185 = vsyncpa [#allocation4 + $0x1], 1 }

</bundles_post_ra>
